<compile_context>
chip_gen: v6e
topology: v6e:2x2x1
jax: 0.10.0
libtpu: 0.0.40
codegen_flags: <defaults>
</compile_context>

<pallas_src>
import functools

import jax
import jax.numpy as jnp
from jax.experimental import pallas as pl
from jax.experimental.pallas import tpu as pltpu

_LANES = 128


def _f_ca_kernel(x_ref, o_ref, *, k1, k2, k3, c):
    # Load in storage dtype, widen to f32 for the math (v5e has no bf16 EUP).
    x = x_ref[...].astype(jnp.float32)
    # gate = 1 / (1 + exp(c - k1*x)) = sigmoid(k1*x - c)
    #      = 0.5 + 0.5 * tanh(0.5 * (k1*x - c))
    # tanh saturates, so the reference's clamp(-60, 60) is unnecessary; the
    # difference vs the clamped form is < 1e-26 absolute.
    gate = 0.5 + 0.5 * jnp.tanh(0.5 * (x * k1 - c))
    # -a * (scale*x - b) == k2*x + k3   (constants folded at trace time)
    num = k2 * x + k3
    o_ref[...] = (num * gate).astype(o_ref.dtype)


def _round_up(v, m):
    return ((v + m - 1) // m) * m


def f_ca(x, scale=1.0, a=0.129, b=69.62, c=-4.4, d=4.25, *,
         block_bytes=4 << 20, min_grid_steps=8):
    """Elementwise F_Ca applied to an arbitrary-shape float array."""
    orig_shape = x.shape
    dtype = x.dtype
    n = x.size
    if n == 0:
        return x

    x_flat = x.reshape(-1)            # free (bitcast) reshape
    tail = n % _LANES
    if tail:
        # Rare unaligned case: pad the flat array up to a lane multiple.
        # This costs one extra read+write pass over the tensor.
        # TODO(synk): for huge unaligned arrays, scalar-prefetch the true
        # length and mask the final store in-kernel to stay single-pass.
        x_flat = jnp.pad(x_flat, (0, _LANES - tail))
    rows = x_flat.size // _LANES
    x2d = x_flat.reshape(rows, _LANES)

    itemsize = jnp.dtype(dtype).itemsize
    # ~block_bytes of input per grid step (8192 rows f32 / 16384 rows bf16).
    cap_rows = max(8, (block_bytes // (_LANES * itemsize)) // 8 * 8)
    # ...but keep at least ~min_grid_steps blocks when the array is big
    # enough, so the "parallel" grid axis can feed both v7x TensorCores.
    split_rows = _round_up(pl.cdiv(rows, min_grid_steps), 8)
    if rows <= 8:
        br = rows                     # block == full dim (allowed when < 8)
    else:
        br = max(8, min(cap_rows, split_rows, (rows // 8) * 8))
    grid = pl.cdiv(rows, br)

    # Constant-folded scalars.
    k1 = float(scale) / float(d)
    k2 = -float(a) * float(scale)
    k3 = float(a) * float(b)
    kernel = functools.partial(_f_ca_kernel, k1=k1, k2=k2, k3=k3, c=float(c))

    cost = pl.CostEstimate(
        flops=6 * rows * _LANES,
        transcendentals=rows * _LANES,
        bytes_accessed=2 * rows * _LANES * itemsize,
    )

    out2d = pl.pallas_call(
        kernel,
        out_shape=jax.ShapeDtypeStruct((rows, _LANES), dtype),
        grid_spec=pltpu.PrefetchScalarGridSpec(
            num_scalar_prefetch=0,
            grid=(grid,),
            in_specs=[pl.BlockSpec((br, _LANES), lambda i: (i, 0))],
            out_specs=pl.BlockSpec((br, _LANES), lambda i: (i, 0)),
        ),
        compiler_params=pltpu.CompilerParams(
            dimension_semantics=("parallel",),
            # Raise v5e's 16 MiB default; equals the v6e/v7x default and is
            # well under v7x's 64 MiB physical VMEM.
            vmem_limit_bytes=32 << 20,
        ),
        cost_estimate=cost,
    )(x2d)

    out_flat = out2d.reshape(-1)
    if tail:
        out_flat = out_flat[:n]
    return out_flat.reshape(orig_shape)


def f_ca_reference(x, scale=1.0, a=0.129, b=69.62, c=-4.4, d=4.25):
    xf = x.astype(jnp.float32) * scale
    out = -a * (xf - b) / (1.0 + jnp.exp(jnp.clip(c - xf / d, -60.0, 60.0)))
    return out.astype(x.dtype)


if __name__ == "__main__":
    key = jax.random.PRNGKey(0)

    # NCHW activations, as the PyTorch module would see from a conv stack.
    x = jax.random.normal(key, (2, 4, 16, 16), dtype=jnp.float32) * 10.0
    out = jax.block_until_ready(f_ca(x, scale=1.0))
    ref = f_ca_reference(x, scale=1.0)
    assert out.shape == x.shape and out.dtype == x.dtype
    assert jnp.allclose(out, ref, atol=2e-3, rtol=2e-3), "f32 mismatch vs reference"

    # bf16 path: HBM streams bf16, math widens to f32 inside the kernel.
    xb = x.astype(jnp.bfloat16)
    outb = jax.block_until_ready(f_ca(xb, scale=1.0))
    refb = f_ca_reference(xb, scale=1.0)
    assert outb.shape == xb.shape and outb.dtype == xb.dtype
    assert jnp.allclose(outb.astype(jnp.float32), refb.astype(jnp.float32),
                        atol=5e-2, rtol=5e-2), "bf16 mismatch vs reference"

    # Lane-aligned but rows not a multiple of 8: zero-copy path, partial block.
    x3 = jax.random.normal(jax.random.PRNGKey(2), (3, 128), dtype=jnp.float32) * 10.0
    out3 = jax.block_until_ready(f_ca(x3, scale=0.5))
    ref3 = f_ca_reference(x3, scale=0.5)
    assert jnp.allclose(out3, ref3, atol=2e-3, rtol=2e-3), "partial-block mismatch"

    # Non-128-divisible size exercises the pad/slice fallback path.
    x_odd = jax.random.normal(jax.random.PRNGKey(1), (3, 5, 7),
                              dtype=jnp.float32) * 10.0
    out_odd = jax.block_until_ready(f_ca(x_odd, scale=1.0))
    ref_odd = f_ca_reference(x_odd, scale=1.0)
    assert out_odd.shape == x_odd.shape
    assert jnp.allclose(out_odd, ref_odd, atol=2e-3, rtol=2e-3), "padded mismatch"

    print("KERNEL_OK")
</pallas_src>

<mosaic_0001>
module attributes {stable_mosaic.version = 11 : i64} {
  func.func @_f_ca_kernel(%arg0: i32, %arg1: memref<8x128xf32, #tpu.memory_space<vmem>>, %arg2: memref<8x128xf32, #tpu.memory_space<vmem>>) attributes {dimension_semantics = [#tpu.dimension_semantics<parallel>], iteration_bounds = array<i64: 2>, scalar_prefetch = 0 : i64, scratch_operands = 0 : i64, tpu.core_type = #tpu.core_type<tc>, window_params = [{transform_indices = @transform_0, window_bounds = array<i64: 8, 128>}, {transform_indices = @transform_1, window_bounds = array<i64: 8, 128>}]} {
    %c0 = arith.constant 0 : index
    %c0_0 = arith.constant 0 : index
    %0 = vector.load %arg1[%c0, %c0_0] : memref<8x128xf32, #tpu.memory_space<vmem>>, vector<8x128xf32>
    %cst = arith.constant 0.235294119 : f32
    %1 = vector.broadcast %cst : f32 to vector<8x128xf32>
    %2 = arith.mulf %0, %1 : vector<8x128xf32>
    %cst_1 = arith.constant -4.400000e+00 : f32
    %3 = vector.broadcast %cst_1 : f32 to vector<8x128xf32>
    %4 = arith.subf %2, %3 : vector<8x128xf32>
    %cst_2 = arith.constant 5.000000e-01 : f32
    %5 = vector.broadcast %cst_2 : f32 to vector<8x128xf32>
    %6 = arith.mulf %5, %4 : vector<8x128xf32>
    %7 = math.tanh %6 : vector<8x128xf32>
    %cst_3 = arith.constant 5.000000e-01 : f32
    %8 = vector.broadcast %cst_3 : f32 to vector<8x128xf32>
    %9 = arith.mulf %8, %7 : vector<8x128xf32>
    %cst_4 = arith.constant 5.000000e-01 : f32
    %10 = vector.broadcast %cst_4 : f32 to vector<8x128xf32>
    %11 = arith.addf %10, %9 : vector<8x128xf32>
    %cst_5 = arith.constant -1.290000e-01 : f32
    %12 = vector.broadcast %cst_5 : f32 to vector<8x128xf32>
    %13 = arith.mulf %12, %0 : vector<8x128xf32>
    %cst_6 = arith.constant 8.98097991 : f32
    %14 = vector.broadcast %cst_6 : f32 to vector<8x128xf32>
    %15 = arith.addf %13, %14 : vector<8x128xf32>
    %16 = arith.mulf %15, %11 : vector<8x128xf32>
    %c0_7 = arith.constant 0 : index
    %c0_8 = arith.constant 0 : index
    %17 = vector.load %arg2[%c0_7, %c0_8] : memref<8x128xf32, #tpu.memory_space<vmem>>, vector<8x128xf32>
    tpu.vector_store %arg2[%c0_7, %c0_8], %16 {strides = array<i32>} : memref<8x128xf32, #tpu.memory_space<vmem>>, vector<8x128xf32>,
    return
  }
  func.func @transform_0(%arg0: i32) -> (i32, i32) {
    %c0_i32 = arith.constant 0 : i32
    %c0_i32_0 = arith.constant 0 : i32
    return %arg0, %c0_i32 : i32, i32
  }
  func.func @transform_1(%arg0: i32) -> (i32, i32) {
    %c0_i32 = arith.constant 0 : i32
    %c0_i32_0 = arith.constant 0 : i32
    return %arg0, %c0_i32 : i32, i32
  }
}

</mosaic_0001>

<bundles_post_ra>
// kernel: tpu_custom_call.1
= control target key start
LH: loop header
LB: loop body
LE: loop exit
PB: predicated region body
PF: predicated region fallthrough
CT: control target
= control target key end

     0   :  { %6 = vsyncpa [#allocation3], 0  ;;  %s535_s0 = inlined_call_operand.hbm [shape: f32[16,128], index: 0, kind: input, shape index: {}]   ;;  %s536_s1 = inlined_call_operand.hbm [shape: f32[16,128], index: 1, kind: output, shape index: {}]  }
   0x1   :  { %8 = vsyncpa [#allocation3 + $0x1], 0 }
   0x2   :  { %9 = vsyncpa [#allocation4], 0 }
   0x3   :  { %11 = vsyncpa [#allocation4 + $0x1], 0  ;;  %s394_s6 = smov 0   ;;  %s396_s7 = smov 0  }
   0x4   :  { %s398_s8 = smov 0   ;;  %s400_s9 = smov 0  }
   0x5 LB: > { %s415_s10 = sadd.s32 4294967295, %s380_s9   ;;  %s227_s11 = sadd.s32 4294967294, %s380_s9   ;;  %s380_s9 = sphi %s400_s9, %s553_s9   ;;  %s376_s8 = sphi %s398_s8, %s552_s8   ;;  %s372_s7 = sphi %s396_s7, %s551_s7   ;;  %s368_s6 = sphi %s394_s6, %s550_s6  }
   0x6   : > { %s419_s12 = sadd.s32 1, %s380_s9   ;;  %s24_s13 = sadd.s32 1, %s376_s8 }
   0x7   : > { %s21_s14 = ssub.s32 %s380_s9, %s419_s12  ;;  %p31_p0 = scmp.ne.s32.totalorder %s376_s8, %s372_s7 }
   0x8   : > { %p22_p1 = scmp.eq.s32.totalorder %s21_s14, 0  ;;  %p32_p2 = scmp.eq.s32.totalorder %s380_s9, 0 }
   0x9   : > { %p37_p3 = scmp.ne.s32.totalorder %s372_s7, %s368_s6  ;;  %p38_p4 = scmp.eq.s32.totalorder %s415_s10, 0 }
   0xa   : > { %s431_s15 = scalar_select %p22_p1, %s376_s8, %s24_s13  }
   0xb   : > { %p433_p5 = por %p32_p2, %p31_p0  ;;  %p437_p6 = por %p38_p4, %p37_p3 }
   0xc   : > { %p61_p7 = scmp.eq.s32.totalorder %s415_s10, 1  ;;  %p67_p8 = scmp.eq.s32.totalorder %s227_s11, 1 }
   0xd   : > { %s540_s17 = scalar_select %p437_p6, 1, 0 }
   0xe   : > { %p252_p10 = scmp.lt.s32.totalorder %s380_s9, 2  ;;  %p444_p11 = por %p61_p7, %p31_p0 }
   0xf   : > { %p448_p12 = por %p67_p8, %p37_p3  ;;  %s87_s20 = sand.u32 1, %s376_s8  }
  0x10   : > { %s541_s18 = scalar_select %p444_p11, 1, 0 }
  0x11   : > { %s542_s19 = scalar_select %p448_p12, 1, 0 }
  0x12   : > { %s231_s21 = sshll.u32 %s380_s9, 7  ;;  %s230_s22 = sshll.u32 %s87_s20, 3 }
  0x13   : > { %s457_s25 = scalar_lea.hbm %s535_s0, %s231_s21  ;;  %s91_s26 = scalar_lea.vmem [#allocation2], %s230_s22 }
  0x14   : > { %s98_s27 = sshll.u32 %s91_s26, 4  ;;  %p461_p13 = pnand %p252_p10, %p433_p5  ;;  %s465_s27 = int_to_ptr.vmem [resolvable:$true] %s98_s27 }
  0x15   : > { %s88_s29 = scalar_lea.sflag [#allocation3], %s87_s20  ;;  %s288_s30 = scalar_lea.hbm %s457_s25, 128 }
  0x16   : > { %p289_p2 = scmp.ne.s32.totalorder %s457_s25, %s288_s30  ;;  %p290_p3 = pneg %p461_p13 }
  0x17   : > { %s293_s4 = scalar_lea.hbm %s535_s0, 256  ;;  %p294_p5 = scmp.lt.s32.totalorder %s457_s25, %s535_s0 }
  0x18   : > { %p291_p4 = pnand %p290_p3, %p289_p2  ;;  %p295_p8 = scmp.lt.s32.totalorder %s293_s4, %s288_s30 }
  0x1a   : > { %p292_p7 = pneg %p291_p4  ;;  %p296_p10 = por %p295_p8, %p294_p5 }
  0x1c   : > { %p297_p9 = pnand %p296_p10, %p292_p7 }
  0x1e   : > { %300 = shalt.err (!%p297_p9)
}
  0x1f   : > { %s301_s13 = scalar_lea.vmem %s465_s27, 128  ;;  %s382_s14 = smov [#allocation2]  }
  0x20   : > { %p302_p0 = scmp.ne.s32.totalorder %s465_s27, %s301_s13  ;;  %s306_s16 = sshll.u32 %s382_s14, 4  ;;  %s307_s16 = int_to_ptr.vmem [resolvable:$false] %s306_s16 }
  0x21   : > { %s308_s20 = scalar_lea.vmem %s307_s16, 256  ;;  %p309_p4 = scmp.lt.s32.totalorder %s465_s27, %s307_s16 }
  0x22   : > { %p304_p1 = pnand %p302_p0, %p290_p3  ;;  %p310_p12 = scmp.lt.s32.totalorder %s308_s20, %s301_s13 }
  0x24   : > { %p305_p2 = pneg %p304_p1  ;;  %p311_p11 = por %p310_p12, %p309_p4 }
  0x26   : > { %p312_p6 = pnand %p311_p11, %p305_p2 }
  0x28   : > { %315 = shalt.err (!%p312_p6)
}
  0x29   : > { %247 = dma.hbm_to_vmem [thread:$0]  (!%p461_p13), %s457_s25, 128, %s465_s27, %s88_s29  }
  0x2a   : > { %p544_p9 = scmp.lt.s32.totalorder %s380_s9, 3  ;;  %p545_p7 = scmp.ge.s32.totalorder %s380_s9, 1 }
  0x2c   : > { %p104_p0 = pnand %p545_p7, %p544_p9 }
  0x2d   : > { %s492_s21 = sand.u32 (!%p104_p0), 1, %s372_s7   ;;  %p546_p6 = scmp.ne.s32.totalorder (!%p104_p0), %s540_s17, 0 }
  0x2e   : > { %107 = sbr.rel (%p104_p0) target bundleno = 92 (0x5c), region = 24  ;;  %s233_s22 = sshll.u32 (!%p104_p0), %s492_s21, 3 }
  0x2f   : > { %s110_s23 = scalar_lea.sflag (!%p104_p0), [#allocation3], %s492_s21  ;;  %s113_s24 = scalar_lea.vmem (!%p104_p0), [#allocation2], %s233_s22 }
  0x33   : > { %359 = dma.done.wait (%p546_p6), %s110_s23, 128  }
  0x34   : > { %361 = vsyncadd (%p546_p6), %s110_s23, 4294967168  ;;  %v132_v0 = vld [vmem:[%s113_s24] sm:$0xff]  ;;  %s131_s25 = scalar_lea.vmem [#allocation5], %s233_s22  ;;  %s237_s27 = sshll.u32 %s415_s10, 7 }
  0x35   : > { %v133_v1 = vmul.f32 0.23529412, %v132_v0  ;;  %v139_v4 = vmul.f32 -0.129, %v132_v0  ;;  %s157_s26 = sshll.u32 %s131_s25, 4  ;;  %s155_s29 = scalar_lea.hbm %s536_s1, %s237_s27  ;;  %s158_s26 = int_to_ptr.vmem [resolvable:$true] %s157_s26 }
  0x36   : > { %s144_s30 = scalar_lea.sflag [#allocation4], %s492_s21  ;;  %s316_s2 = scalar_lea.vmem %s158_s26, 128 }
  0x37   : > { %v235_v2 = vadd.f32 4.4, %v133_v1  ;;  %v140_v7 = vadd.f32 8.98098, %v139_v4  ;;  %p317_p11 = scmp.ne.s32.totalorder %s158_s26, %s316_s2  ;;  %p547_p12 = scmp.ne.s32.totalorder %s541_s18, 0 }
  0x38   : > { %s383_s3 = smov [#allocation5]  }
  0x39   : > { %v135_v3 = vmul.f32 0.5, %v235_v2  ;;  %p318_p13 = pnand %p317_p11, %p547_p12  ;;  %s320_s4 = sshll.u32 %s383_s3, 4  ;;  %s321_s4 = int_to_ptr.vmem [resolvable:$false] %s320_s4 }
  0x3a   : > { %s322_s5 = scalar_lea.vmem %s321_s4, 256  ;;  %p323_p3 = scmp.lt.s32.totalorder %s158_s26, %s321_s4 }
  0x3b   : > { %286 = vtanh.f32 %v135_v3  ;;  %p319_p1 = pneg %p318_p13  ;;  %p324_p5 = scmp.lt.s32.totalorder %s322_s5, %s316_s2 }
  0x3d   : > { %p325_p8 = por %p324_p5, %p323_p3 }
  0x3f   : > { %p326_p10 = pnand %p325_p8, %p319_p1 }
  0x48   : > { %v287_v5 = vpop.eup %286 }
  0x49   : > { %v137_v6 = vmul.f32 0.5, %v287_v5 }
  0x4b   : > { %v138_v8 = vadd.f32 0.5, %v137_v6 }
  0x4d   : > { %v141_v9 = vmul.f32 %v140_v7, %v138_v8 }
  0x4f   : > { %142 = vst [vmem:[%s131_s25] sm:$0xff] %v141_v9 }
  0x50   : > { %329 = shalt.err (!%p326_p10)
}
  0x51   : > { %s330_s10 = scalar_lea.hbm %s155_s29, 128  ;;  %s334_s14 = scalar_lea.hbm %s536_s1, 256 }
  0x52   : > { %p331_p2 = scmp.ne.s32.totalorder %s155_s29, %s330_s10  ;;  %p335_p7 = scmp.lt.s32.totalorder %s155_s29, %s536_s1 }
  0x53   : > { %p336_p0 = scmp.lt.s32.totalorder %s334_s14, %s330_s10 }
  0x54   : > { %p332_p4 = pnand %p331_p2, %p547_p12 }
  0x55   : > { %p337_p6 = por %p336_p0, %p335_p7 }
  0x56   : > { %p333_p9 = pneg %p332_p4 }
  0x58   : > { %p338_p11 = pnand %p337_p6, %p333_p9 }
  0x5a   : > { %341 = shalt.err (!%p338_p11)
}
  0x5b   : > { %242 = dma.vmem_to_hbm [thread:$0]  (%p547_p12), %s158_s26, 128, %s155_s29, %s144_s30  }
  0x5c PF: > { %s169_s21 = sand.u32 1, %s368_s6   ;;  %p548_p13 = scmp.ne.s32.totalorder %s542_s19, 0 }
  0x5d   : > { %p549_p1 = scmp.ge.s32.totalorder %s380_s9, 2  ;;  %s170_s22 = scalar_lea.sflag [#allocation4], %s169_s21 }
  0x5f   : > { %p249_p3 = pnand %p549_p1, %p548_p13 }
  0x61   : > { %p250_p5 = pneg %p249_p3 }
  0x63   : > { %363 = dma.done.wait (%p250_p5), %s170_s22, 128  }
  0x64   : > { %365 = vsyncadd (%p250_p5), %s170_s22, 4294967168  ;;  %p14_p8 = scmp.ge.s32.totalorder %s419_s12, 4   ;;  %s550_s6 = smov %s372_s7 }
  0x65   : > { %s551_s7 = smov %s376_s8  ;;  %s552_s8 = smov %s431_s15 }
  0x66   : > { %s553_s9 = smov %s419_s12  ;;  %16 = sbr.rel (!%p14_p8) target bundleno = 5 (0x5), region = 69 }
  0x6b   :  { %175 = vsyncpa [#allocation3], 1 }
  0x6c   :  { %177 = vsyncpa [#allocation3 + $0x1], 1 }
  0x6d   :  { %178 = vsyncpa [#allocation4], 1 }
  0x6e   :  { %180 = vsyncpa [#allocation4 + $0x1], 1 }

</bundles_post_ra>
